<compile_context>
chip_gen: v7x
topology: tpu7x:2x2x1
jax: 0.10.0
libtpu: 0.0.40
codegen_flags: <defaults>
</compile_context>

<pallas_src>
import math
import functools
import numpy as np
import jax
import jax.numpy as jnp
from jax.experimental import pallas as pl
from jax.experimental.pallas import tpu as pltpu


# ----------------------------------------------------------------------------
# Spectral filters (phi): deterministic host-side precompute mirroring
# get_hankel / get_spectral_filters (eigendecomposition is not a kernel op).
# ----------------------------------------------------------------------------
def get_phi(seq_len: int, K: int, dtype=jnp.float32) -> jnp.ndarray:
    entries = np.arange(1, seq_len + 1, dtype=np.float64)
    i_plus_j = entries[:, None] + entries[None, :]
    Z = 2.0 / (i_plus_j ** 3 - i_plus_j + 1e-07)
    sigma, phi = np.linalg.eigh(Z)
    sigma, phi = sigma[-K:], phi[:, -K:]
    phi = phi * sigma ** 0.25
    return jnp.asarray(phi, dtype=dtype)


# ----------------------------------------------------------------------------
# Pallas kernel: one token tile per grid step.
#   s   = phi_tile + x_tile @ diag^T              (fused score projection, f32)
#   per head: z = x[:, h*d_h:(h+1)*d_h] @ W_h     (one wide MXU matmul, f32 acc)
#             acc = sum_k z[:, k*d_o:(k+1)*d_o] * s[:, k]
#   heads stored in 128-lane groups directly into o_ref (no full concat).
# ----------------------------------------------------------------------------
def _spectral_moe_kernel(x_ref, phi_ref, dT_ref, w_ref, o_ref, *, H, K, d_h, d_o):
    x = x_ref[...]                                                   # (BTt, Din)
    bt = x.shape[0]

    # Fused score projection on the already-loaded x tile.
    s = phi_ref[...].astype(jnp.float32) + jnp.dot(
        x, dT_ref[...], preferred_element_type=jnp.float32)         # (BTt, K)

    # Hoist the K score lane-broadcasts out of the per-head loop.
    s_b = [jnp.broadcast_to(s[:, k:k + 1], (bt, d_o)) for k in range(K)]

    # Group heads so each store covers a multiple of 128 lanes (no vst.msk).
    if d_o % 128 == 0:
        group = 1
    elif 128 % d_o == 0 and H % (128 // d_o) == 0:
        group = 128 // d_o
    else:
        group = H

    for g0 in range(0, H, group):                 # static unroll over head groups
        accs = []
        for h in range(g0, g0 + group):
            xh = x[:, h * d_h:(h + 1) * d_h]                         # (BTt, d_h)
            # One wide MXU matmul per head: N = K*d_o output lanes.
            z = jnp.dot(xh, w_ref[h], preferred_element_type=jnp.float32)  # (BTt, K*d_o)
            acc = z[:, 0:d_o] * s_b[0]
            for k in range(1, K):                 # static unroll: VPU epilogue
                acc = acc + z[:, k * d_o:(k + 1) * d_o] * s_b[k]
            accs.append(acc)
        out = accs[0] if group == 1 else jnp.concatenate(accs, axis=1)
        o_ref[:, g0 * d_o:(g0 + group) * d_o] = out.astype(o_ref.dtype)


# ----------------------------------------------------------------------------
# Token-tile chooser: multiple of 8, >= 2 grid steps when possible (v7x dual-TC),
# capped by a conservative VMEM budget (double-buffered x / phi / out tiles).
# ----------------------------------------------------------------------------
def _choose_bt_tile(BT, Din, out_w, K, target=1024, vmem_budget=24 << 20, itemsize=4):
    if BT <= 8:
        return BT                                  # full (tiny) extent
    half = -(-BT // 2)                             # cdiv(BT, 2): allow >= 2 grid steps
    half = -(-half // 8) * 8                       # round up to multiple of 8
    t = max(8, (min(target, half) // 8) * 8)

    def tile_bytes(tt):                            # double-buffered streamed tiles
        return 2 * tt * (Din + K + out_w) * itemsize

    while t > 8 and tile_bytes(t) > vmem_budget:
        t = max(8, (t // 2 // 8) * 8)
    return t


# ----------------------------------------------------------------------------
# Wrapper: only cheap layout prep in XLA, all HBM-heavy work in the kernel.
# ----------------------------------------------------------------------------
def spectral_moe_heads(x, weight, diag, phi, *, bt_tile_target: int = 1024):
    B, T, Din = x.shape
    H, K, d_h, d_o = weight.shape
    assert Din == H * d_h, "in_features must equal H * d_h"
    assert T <= phi.shape[0], "Sequence length exceeds max_seq_len"
    BT = B * T
    d_out = H * d_o

    # Small resident operands.
    # TODO(synk): cache w_fused / diag_T at module init instead of per call.
    w_fused = weight.transpose(0, 2, 1, 3).reshape(H, d_h, K * d_o)   # (H, d_h, K*d_o)
    diag_T = jnp.asarray(diag, dtype=jnp.float32).T                   # (Din, K)
    # phi pre-broadcast over batch so it streams with the token tiles (tiny).
    phi_bt = jnp.tile(jnp.asarray(phi[:T], dtype=jnp.float32), (B, 1))  # (BT, K)

    x_flat = x.reshape(BT, Din)

    BTt = _choose_bt_tile(BT, Din, d_out, K, target=bt_tile_target)
    grid = (pl.cdiv(BT, BTt),)   # ragged last block masked by Pallas

    kernel = functools.partial(_spectral_moe_kernel, H=H, K=K, d_h=d_h, d_o=d_o)

    out = pl.pallas_call(
        kernel,
        out_shape=jax.ShapeDtypeStruct((BT, d_out), x.dtype),
        grid_spec=pltpu.PrefetchScalarGridSpec(
            num_scalar_prefetch=0,
            grid=grid,
            in_specs=[
                pl.BlockSpec((BTt, Din), lambda i: (i, 0)),            # x tile (streamed)
                pl.BlockSpec((BTt, K), lambda i: (i, 0)),              # phi tile (streamed)
                pl.BlockSpec((Din, K), lambda i: (0, 0)),              # diag^T (resident)
                pl.BlockSpec((H, d_h, K * d_o), lambda i: (0, 0, 0)),  # fused weights (resident)
            ],
            out_specs=pl.BlockSpec((BTt, d_out), lambda i: (i, 0)),    # lane-dense out tile
        ),
        compiler_params=pltpu.CompilerParams(
            dimension_semantics=("parallel",)),    # token tiles are independent
    )(x_flat, phi_bt, diag_T, w_fused)

    return out.reshape(B, T, d_out)


# ----------------------------------------------------------------------------
# Pure-JAX reference (mirrors the PyTorch forward exactly).
# ----------------------------------------------------------------------------
def spectral_moe_heads_ref(x, weight, diag, phi):
    B, T, _ = x.shape
    H, K, d_h, d_o = weight.shape
    scores = phi[:T][None] + jnp.einsum('btd,kd->btk', x, diag)
    xh = x.reshape(B, T, H, d_h).transpose(0, 2, 1, 3)
    z = jnp.einsum('bhti,hkio->bhkto', xh, weight)
    y = jnp.einsum('bhkto,btk->btho', z, scores)
    return y.reshape(B, T, H * d_o)


if __name__ == "__main__":
    # Small, TPU-friendly shapes consistent with the module.
    B, T = 2, 8
    max_seq_len = 16
    num_heads = 2
    num_experts = 4
    in_features = 128   # d_h = 64
    out_features = 128  # d_o = 64
    d_h = in_features // num_heads
    d_o = out_features // num_heads

    key = jax.random.PRNGKey(0)
    kx, kw, kd = jax.random.split(key, 3)

    x = jax.random.normal(kx, (B, T, in_features), dtype=jnp.float32)

    # weight: (H, K, d_h, d_o), kaiming_uniform(a=sqrt(5)) -> U(-1/sqrt(fan_in), 1/sqrt(fan_in))
    fan_in = num_experts * d_h * d_o
    bound = 1.0 / math.sqrt(fan_in)
    weight = jax.random.uniform(kw, (num_heads, num_experts, d_h, d_o),
                                minval=-bound, maxval=bound, dtype=jnp.float32)

    # diag: (K, in_features). Module init is zeros; use small deterministic random
    # values so the fused score-projection path is actually exercised.
    diag = 0.02 * jax.random.normal(kd, (num_experts, in_features), dtype=jnp.float32)

    phi = get_phi(max_seq_len, num_experts, dtype=jnp.float32)  # (max_seq_len, K)

    y = spectral_moe_heads(x, weight, diag, phi)
    y = jax.block_until_ready(y)

    y_ref = spectral_moe_heads_ref(x, weight, diag, phi)
    np.testing.assert_allclose(np.asarray(y), np.asarray(y_ref),
                               rtol=2e-2, atol=2e-3)

    print("KERNEL_OK")
</pallas_src>

<mosaic_0001>
module attributes {stable_mosaic.version = 11 : i64} {
  func.func @_spectral_moe_kernel(%arg0: i32, %arg1: memref<8x128xf32, #tpu.memory_space<vmem>>, %arg2: memref<8x4xf32, #tpu.memory_space<vmem>>, %arg3: memref<128x4xf32, #tpu.memory_space<vmem>>, %arg4: memref<2x64x256xf32, #tpu.memory_space<vmem>>, %arg5: memref<8x128xf32, #tpu.memory_space<vmem>>) attributes {dimension_semantics = [#tpu.dimension_semantics<parallel>], iteration_bounds = array<i64: 2>, scalar_prefetch = 0 : i64, scratch_operands = 0 : i64, tpu.core_type = #tpu.core_type<tc>, window_params = [{transform_indices = @transform_0, window_bounds = array<i64: 8, 128>}, {transform_indices = @transform_1, window_bounds = array<i64: 8, 4>}, {pipeline_mode = #tpu.pipeline_mode<synchronous>, transform_indices = @transform_2, window_bounds = array<i64: 128, 4>}, {pipeline_mode = #tpu.pipeline_mode<synchronous>, transform_indices = @transform_3, window_bounds = array<i64: 2, 64, 256>}, {transform_indices = @transform_4, window_bounds = array<i64: 8, 128>}]} {
    %c0 = arith.constant 0 : index
    %c0_0 = arith.constant 0 : index
    %0 = vector.load %arg1[%c0, %c0_0] : memref<8x128xf32, #tpu.memory_space<vmem>>, vector<8x128xf32>
    %c0_1 = arith.constant 0 : index
    %c0_2 = arith.constant 0 : index
    %1 = vector.load %arg2[%c0_1, %c0_2] : memref<8x4xf32, #tpu.memory_space<vmem>>, vector<8x4xf32>
    %c0_3 = arith.constant 0 : index
    %c0_4 = arith.constant 0 : index
    %2 = vector.load %arg3[%c0_3, %c0_4] : memref<128x4xf32, #tpu.memory_space<vmem>>, vector<128x4xf32>
    %cst = arith.constant dense<0.000000e+00> : vector<8x4xf32>
    %3 = tpu.matmul %0, %2, %cst {dimension_numbers = #tpu.dot_dimension_numbers<[1], [0], [0], [1], [0, 0, 1, 1], [], []>} : vector<8x128xf32>, vector<128x4xf32>, vector<8x4xf32> -> vector<8x4xf32>
    %4 = arith.addf %1, %3 : vector<8x4xf32>
    %5 = vector.extract_strided_slice %4 {offsets = [0, 0], sizes = [8, 1], strides = [1, 1]} : vector<8x4xf32> to vector<8x1xf32>
    %6 = vector.shape_cast %5 : vector<8x1xf32> to vector<8x1xf32>
    %7 = vector.broadcast %6 : vector<8x1xf32> to vector<8x64xf32>
    %8 = vector.extract_strided_slice %4 {offsets = [0, 1], sizes = [8, 1], strides = [1, 1]} : vector<8x4xf32> to vector<8x1xf32>
    %9 = vector.shape_cast %8 : vector<8x1xf32> to vector<8x1xf32>
    %10 = vector.broadcast %9 : vector<8x1xf32> to vector<8x64xf32>
    %11 = vector.extract_strided_slice %4 {offsets = [0, 2], sizes = [8, 1], strides = [1, 1]} : vector<8x4xf32> to vector<8x1xf32>
    %12 = vector.shape_cast %11 : vector<8x1xf32> to vector<8x1xf32>
    %13 = vector.broadcast %12 : vector<8x1xf32> to vector<8x64xf32>
    %14 = vector.extract_strided_slice %4 {offsets = [0, 3], sizes = [8, 1], strides = [1, 1]} : vector<8x4xf32> to vector<8x1xf32>
    %15 = vector.shape_cast %14 : vector<8x1xf32> to vector<8x1xf32>
    %16 = vector.broadcast %15 : vector<8x1xf32> to vector<8x64xf32>
    %17 = vector.extract_strided_slice %0 {offsets = [0, 0], sizes = [8, 64], strides = [1, 1]} : vector<8x128xf32> to vector<8x64xf32>
    %c0_5 = arith.constant 0 : index
    %c0_6 = arith.constant 0 : index
    %c0_7 = arith.constant 0 : index
    %18 = vector.load %arg4[%c0_5, %c0_6, %c0_7] : memref<2x64x256xf32, #tpu.memory_space<vmem>>, vector<1x64x256xf32>
    %19 = vector.shape_cast %18 : vector<1x64x256xf32> to vector<64x256xf32>
    %cst_8 = arith.constant dense<0.000000e+00> : vector<8x256xf32>
    %20 = tpu.matmul %17, %19, %cst_8 {dimension_numbers = #tpu.dot_dimension_numbers<[1], [0], [0], [1], [0, 0, 1, 1], [], []>} : vector<8x64xf32>, vector<64x256xf32>, vector<8x256xf32> -> vector<8x256xf32>
    %21 = vector.extract_strided_slice %20 {offsets = [0, 0], sizes = [8, 64], strides = [1, 1]} : vector<8x256xf32> to vector<8x64xf32>
    %22 = arith.mulf %21, %7 : vector<8x64xf32>
    %23 = vector.extract_strided_slice %20 {offsets = [0, 64], sizes = [8, 64], strides = [1, 1]} : vector<8x256xf32> to vector<8x64xf32>
    %24 = arith.mulf %23, %10 : vector<8x64xf32>
    %25 = arith.addf %22, %24 : vector<8x64xf32>
    %26 = vector.extract_strided_slice %20 {offsets = [0, 128], sizes = [8, 64], strides = [1, 1]} : vector<8x256xf32> to vector<8x64xf32>
    %27 = arith.mulf %26, %13 : vector<8x64xf32>
    %28 = arith.addf %25, %27 : vector<8x64xf32>
    %29 = vector.extract_strided_slice %20 {offsets = [0, 192], sizes = [8, 64], strides = [1, 1]} : vector<8x256xf32> to vector<8x64xf32>
    %30 = arith.mulf %29, %16 : vector<8x64xf32>
    %31 = arith.addf %28, %30 : vector<8x64xf32>
    %32 = vector.extract_strided_slice %0 {offsets = [0, 64], sizes = [8, 64], strides = [1, 1]} : vector<8x128xf32> to vector<8x64xf32>
    %c1 = arith.constant 1 : index
    %c0_9 = arith.constant 0 : index
    %c0_10 = arith.constant 0 : index
    %33 = vector.load %arg4[%c1, %c0_9, %c0_10] : memref<2x64x256xf32, #tpu.memory_space<vmem>>, vector<1x64x256xf32>
    %34 = vector.shape_cast %33 : vector<1x64x256xf32> to vector<64x256xf32>
    %cst_11 = arith.constant dense<0.000000e+00> : vector<8x256xf32>
    %35 = tpu.matmul %32, %34, %cst_11 {dimension_numbers = #tpu.dot_dimension_numbers<[1], [0], [0], [1], [0, 0, 1, 1], [], []>} : vector<8x64xf32>, vector<64x256xf32>, vector<8x256xf32> -> vector<8x256xf32>
    %36 = vector.extract_strided_slice %35 {offsets = [0, 0], sizes = [8, 64], strides = [1, 1]} : vector<8x256xf32> to vector<8x64xf32>
    %37 = arith.mulf %36, %7 : vector<8x64xf32>
    %38 = vector.extract_strided_slice %35 {offsets = [0, 64], sizes = [8, 64], strides = [1, 1]} : vector<8x256xf32> to vector<8x64xf32>
    %39 = arith.mulf %38, %10 : vector<8x64xf32>
    %40 = arith.addf %37, %39 : vector<8x64xf32>
    %41 = vector.extract_strided_slice %35 {offsets = [0, 128], sizes = [8, 64], strides = [1, 1]} : vector<8x256xf32> to vector<8x64xf32>
    %42 = arith.mulf %41, %13 : vector<8x64xf32>
    %43 = arith.addf %40, %42 : vector<8x64xf32>
    %44 = vector.extract_strided_slice %35 {offsets = [0, 192], sizes = [8, 64], strides = [1, 1]} : vector<8x256xf32> to vector<8x64xf32>
    %45 = arith.mulf %44, %16 : vector<8x64xf32>
    %46 = arith.addf %43, %45 : vector<8x64xf32>
    %47 = tpu.concatenate %31, %46 in 1 : vector<8x64xf32>, vector<8x64xf32> -> vector<8x128xf32>
    %c0_12 = arith.constant 0 : index
    %c0_13 = arith.constant 0 : index
    %48 = vector.load %arg5[%c0_12, %c0_13] : memref<8x128xf32, #tpu.memory_space<vmem>>, vector<8x128xf32>
    tpu.vector_store %arg5[%c0_12, %c0_13], %47 {strides = array<i32>} : memref<8x128xf32, #tpu.memory_space<vmem>>, vector<8x128xf32>,
    return
  }
  func.func @transform_0(%arg0: i32) -> (i32, i32) {
    %c0_i32 = arith.constant 0 : i32
    %c0_i32_0 = arith.constant 0 : i32
    return %arg0, %c0_i32 : i32, i32
  }
  func.func @transform_1(%arg0: i32) -> (i32, i32) {
    %c0_i32 = arith.constant 0 : i32
    %c0_i32_0 = arith.constant 0 : i32
    return %arg0, %c0_i32 : i32, i32
  }
  func.func @transform_2(%arg0: i32) -> (i32, i32) {
    %c0_i32 = arith.constant 0 : i32
    %c0_i32_0 = arith.constant 0 : i32
    %c0_i32_1 = arith.constant 0 : i32
    return %c0_i32, %c0_i32_0 : i32, i32
  }
  func.func @transform_3(%arg0: i32) -> (i32, i32, i32) {
    %c0_i32 = arith.constant 0 : i32
    %c0_i32_0 = arith.constant 0 : i32
    %c0_i32_1 = arith.constant 0 : i32
    %c0_i32_2 = arith.constant 0 : i32
    return %c0_i32, %c0_i32_0, %c0_i32_1 : i32, i32, i32
  }
  func.func @transform_4(%arg0: i32) -> (i32, i32) {
    %c0_i32 = arith.constant 0 : i32
    %c0_i32_0 = arith.constant 0 : i32
    return %arg0, %c0_i32 : i32, i32
  }
}

</mosaic_0001>

<bundles_post_ra>
// kernel: tpu_custom_call.1
= control target key start
LH: loop header
LB: loop body
LE: loop exit
PB: predicated region body
PF: predicated region fallthrough
CT: control target
= control target key end

     0   :  { %9 = vsyncpa [#allocation3], 0  ;;  %s1186_s0 = inlined_call_operand.vmem [shape: f32[16,128], index: 0, kind: input, shape index: {}]   ;;  %s1187_s1 = inlined_call_operand.vmem [shape: f32[16,4], index: 1, kind: input, shape index: {}]   ;;  %s1188_s2 = inlined_call_operand.vmem [shape: f32[128,4], index: 2, kind: input, shape index: {}]   ;;  %s1189_s3 = inlined_call_operand.hbm [shape: f32[2,64,256], index: 3, kind: input, shape index: {}]   ;;  %s1190_s4 = inlined_call_operand.hbm [shape: f32[16,128], index: 4, kind: output, shape index: {}]  }
   0x1   :  { %10 = vsyncpa [#allocation4], 0 }
   0x2   :  { %12 = vsyncpa [#allocation4 + $0x1], 0  ;;  %s968_s15 = smov 0   ;;  %s970_s16 = smov 0  }
   0x3   :  { %s972_s17 = smov 0   ;;  %s974_s18 = smov 0  }
   0x4 LB: > { %s989_s19 = sadd.s32 4294967295, %s929_s18   ;;  %s647_s20 = sadd.s32 4294967294, %s929_s18   ;;  %s929_s18 = sphi %s974_s18, %s1206_s18   ;;  %s925_s17 = sphi %s972_s17, %s1205_s17   ;;  %s921_s16 = sphi %s970_s16, %s1204_s16   ;;  %s917_s15 = sphi %s968_s15, %s1203_s15  }
   0x5   : > { %s993_s21 = sadd.s32 1, %s929_s18   ;;  %s119_s22 = sadd.s32 1, %s925_s17 }
   0x6   : > { %s116_s23 = ssub.s32 %s929_s18, %s993_s21  ;;  %p129_p0 = scmp.ne.s32.totalorder %s925_s17, %s921_s16 }
   0x7   : > { %p117_p1 = scmp.eq.s32.totalorder %s116_s23, 0  ;;  %p130_p2 = scmp.eq.s32.totalorder %s989_s19, 1 }
   0x8   : > { %p135_p3 = scmp.ne.s32.totalorder %s921_s16, %s917_s15  ;;  %p136_p4 = scmp.eq.s32.totalorder %s647_s20, 1 }
   0x9   : > { %s1004_s24 = scalar_select %p117_p1, %s925_s17, %s119_s22  }
   0xa   : > { %p1006_p5 = por %p130_p2, %p129_p0  ;;  %p1010_p6 = por %p136_p4, %p135_p3 }
   0xb   : > { %p648_p7 = scmp.ge.s32.totalorder %s929_s18, 1  ;;  %p143_p8 = scmp.lt.s32.totalorder %s929_s18, 3 }
   0xc   : > { %s1194_s25 = scalar_select %p1006_p5, 1, 0 }
   0xd   : > { %s1195_s26 = scalar_select %p1010_p6, 1, 0 }
   0xe   : > { %p1191_p9 = scmp.eq.s32.totalorder %s989_s19, 0  ;;  %p1017_p10 = pnand %p648_p7, %p143_p8 }
   0xf   : > { %s931_s28 = smov [#allocation2]   ;;  %s835_s7 = scalar_lea.hbm %s1189_s3, 4096 }
  0x10   : > { %s1196_s27 = scalar_select %p1017_p10, 1, 0 }
  0x11   : > { %s158_s29 = sshll.u32 %s931_s28, 4  ;;  %p776_p11 = pneg %p1017_p10  ;;  %s159_s29 = int_to_ptr.vmem [resolvable:$true] %s158_s29 }
  0x12   : > { %p836_p13 = scmp.ne.s32.totalorder %s1189_s3, %s835_s7  ;;  %p842_p3 = scmp.lt.u32.totalorder %s835_s7, %s1189_s3 }
  0x13   : > { %p1025_p12 = pnand %p1191_p9, %p776_p11 }
  0x15   : > { %p837_p0 = pneg %p1025_p12 }
  0x17   : > { %p838_p1 = pnand %p837_p0, %p836_p13 }
  0x19   : > { %p839_p2 = pneg %p838_p1 }
  0x1b   : > { %p844_p4 = pnand %p842_p3, %p839_p2 }
  0x1d   : > { %847 = shalt.err (!%p844_p4)
}
  0x1e   : > { %s848_s12 = scalar_lea.vmem %s159_s29, 4096  ;;  %p856_p9 = scmp.lt.s32.totalorder %s159_s29, %s159_s29 }
  0x1f   : > { %p849_p7 = scmp.ne.s32.totalorder %s159_s29, %s848_s12  ;;  %p857_p6 = scmp.lt.s32.totalorder %s848_s12, %s848_s12 }
  0x21   : > { %p851_p8 = pnand %p849_p7, %p837_p0  ;;  %p858_p5 = por %p857_p6, %p856_p9 }
  0x23   : > { %p852_p11 = pneg %p851_p8 }
  0x25   : > { %p859_p10 = pnand %p858_p5, %p852_p11 }
  0x27   : > { %862 = shalt.err (!%p859_p10)
}
  0x28   : > { %s932_s13 = smov 256   ;;  %s933_s14 = smov 16  }
  0x29   : > { %779 = dma.hbm_to_vmem [thread:$0]  (!%p1025_p12), %s1189_s3, 4096, %s159_s29, [#allocation3], %s932_s13, %s932_s13, %s933_s14  }
  0x2a   : > { %p1198_p13 = scmp.ne.s32.totalorder %s1196_s27, 0 }
  0x2b   : > { %p1199_p1 = scmp.eq.s32.totalorder (!%p1198_p13), %s989_s19, 0 }
  0x2c   : > { %188 = sbr.rel (%p1198_p13) target bundleno = 681 (0x2a9), region = 36 }
  0x33   : > { %908 = dma.done.wait (%p1199_p1), [#allocation3], 4096   ;;  %p1200_p0 = pmov %p1199_p1 }
  0x34   : > { %p217_p5 = scmp.lt.s32.totalorder %s989_s19, 1  ;;  %v934_v0 = vmov 0.0|0.0   ;;  %vm935_vm0 = vmmov 0   ;;  %v936_v1 = vmov 0.0   ;;  %v227_v2 = vld [vmem:[%s1188_s2] sm:$0xff]  ;;  %v228_v3 = vld [vmem:[%s1188_s2 + $0x8] sm:$0xff] }
  0x35   : > { %910 = vsyncadd (%p1200_p0), [#allocation3], 4294963200  ;;  %714 = vmatprep.subr.bf16.mxu0 %v934_v0  ;;  %711 = vmatprep.mubr.msk.f32.mxu0 %vm935_vm0, %v936_v1  ;;  %v229_v4 = vld [vmem:[%s1188_s2 + $0x10] sm:$0xff]  ;;  %v715_v5 = vpack.c.bf16 %v228_v3, %v227_v2  ;;  %v230_v6 = vld [vmem:[%s1188_s2 + $0x18] sm:$0xff]  ;;  %s937_s6 = smov 64   ;;  %vm347_vm1 = vcmask 523264  }
  0x36   : > { %s1055_s23 = scalar_select %p217_p5, %s989_s19, 1  ;;  %415 = vmatprep.mubr.f32.mxu1 %v936_v1  ;;  %v718_v7 = vpack.c.bf16 %v230_v6, %v229_v4  ;;  %v231_v8 = vld [vmem:[%s1188_s2 + $0x20] sm:$0xff]  ;;  %v232_v9 = vld [vmem:[%s1188_s2 + $0x28] sm:$0xff]  ;;  %v233_v12 = vld [vmem:[%s1188_s2 + $0x30] sm:$0xff] }
  0x37   : > { %716 = vmatpush3.bf16.msra.mxu0 %v715_v5  ;;  %v332_v11 = vld [vmem:[#allocation2 + $0x8] sm:$0xff]  ;;  %v234_v13 = vld [vmem:[%s1188_s2 + $0x38] sm:$0xff]  ;;  %v331_v15 = vld [vmem:[#allocation2] sm:$0xff]  ;;  %v721_v17 = vpack.c.bf16 %v232_v9, %v231_v8  ;;  %p1201_p9 = scmp.ne.s32.totalorder %s1194_s25, 0  ;;  %s942_s29 = smov [#allocation5]  }
  0x38   : > { %s654_s27 = sshll.u32 %s1055_s23, 3  ;;  %717 = vmatprep.subr.bf16.mxu0 %v934_v0  ;;  %v334_v14 = vld [vmem:[#allocation2 + $0x18] sm:$0xff]  ;;  %v333_v16 = vld [vmem:[#allocation2 + $0x10] sm:$0xff]  ;;  %v336_v20 = vld [vmem:[#allocation2 + $0x28] sm:$0xff]  ;;  %v724_v28 = vpack.c.bf16 %v234_v13, %v233_v12  ;;  %v938_v13 = vmov 3   ;;  %s214_s23 = sand.u32 1, %s921_s16  }
  0x39   : > { %s220_s12 = scalar_lea.vmem %s1186_s0, %s654_s27  ;;  %v738_v18 = vpack.c.bf16 %v334_v14, %v332_v11  ;;  %v740_v19 = vpack.c.bf16 %v333_v16, %v331_v15  ;;  %v338_v21 = vld [vmem:[#allocation2 + $0x38] sm:$0xff]  ;;  %v335_v22 = vld [vmem:[#allocation2 + $0x20] sm:$0xff]  ;;  %v337_v24 = vld [vmem:[#allocation2 + $0x30] sm:$0xff]  ;;  %831 = vset.pattern.permute.xlu1 %v938_v13  ;;  %v939_v14 = vmov 1   ;;  %s224_s11 = scalar_lea.vmem %s1187_s1, %s654_s27 }
  0x3a   : > { %v1083_v10 = vld [vmem:[%s220_s12] sm:$0xff]  ;;  %v742_v23 = vpack.c.bf16 %v338_v21, %v336_v20  ;;  %v340_v25 = vld [vmem:[#allocation2 + $0x48] sm:$0xff]  ;;  %v342_v26 = vld [vmem:[#allocation2 + $0x58] sm:$0xff]  ;;  %v744_v27 = vpack.c.bf16 %v337_v24, %v335_v22  ;;  %830 = vset.pattern.permute.xlu0 %v939_v14  ;;  %v940_v20 = vmov 0   ;;  %v941_v21 = vmov 2   ;;  %s653_s27 = sshll.u32 %s214_s23, 3 }
  0x3b   : > { %454 = vrot.lane.b32.xlu0 %v1083_v10, %s937_s6  ;;  %719 = vmatpush3.bf16.msra.mxu0 %v718_v7  ;;  %v235_v29 = vld [vmem:[%s1188_s2 + $0x40] sm:$0xff]  ;;  %v746_v30 = vpack.c.bf16 %v342_v26, %v340_v25  ;;  %v341_v32 = vld [vmem:[#allocation2 + $0x50] sm:$0xff]  ;;  %v236_v33 = vld [vmem:[%s1188_s2 + $0x48] sm:$0xff]  ;;  %s659_s12 = sshll.u32 %s989_s19, 7  ;;  %s216_s13 = scalar_lea.vmem [#allocation5], %s653_s27 }
  0x3c   : > { %720 = vmatprep.subr.bf16.mxu0 %v934_v0  ;;  %739 = vmatprep.subr.bf16.mxu1 %v738_v18  ;;  %v339_v31 = vld [vmem:[#allocation2 + $0x40] sm:$0xff]  ;;  %v344_v34 = vld [vmem:[#allocation2 + $0x68] sm:$0xff]  ;;  %v346_v35 = vld [vmem:[#allocation2 + $0x78] sm:$0xff]  ;;  %v727_v37 = vpack.c.bf16 %v236_v33, %v235_v29  ;;  %s564_s14 = sshll.u32 %s216_s13, 4  ;;  %s1143_s28 = scalar_lea.hbm %s1190_s4, %s659_s12  ;;  %s1145_s14 = int_to_ptr.vmem [resolvable:$true] %s564_s14 }
  0x3d   : > { %741 = vmatpush1.bf16.msra.mxu1 %v740_v19  ;;  %v748_v36 = vpack.c.bf16 %v341_v32, %v339_v31  ;;  %v237_v38 = vld [vmem:[%s1188_s2 + $0x50] sm:$0xff]  ;;  %v750_v39 = vpack.c.bf16 %v346_v35, %v344_v34  ;;  %v343_v40 = vld [vmem:[#allocation2 + $0x60] sm:$0xff]  ;;  %v238_v42 = vld [vmem:[%s1188_s2 + $0x58] sm:$0xff]  ;;  %s863_s19 = scalar_lea.vmem %s1145_s14, 128  ;;  %s867_s30 = sshll.u32 %s942_s29, 4  ;;  %s868_s30 = int_to_ptr.vmem [resolvable:$false] %s867_s30 }
  0x3e   : > { %743 = vmatprep.subr.bf16.mxu1 %v742_v23  ;;  %v345_v41 = vld [vmem:[#allocation2 + $0x70] sm:$0xff]  ;;  %v439_v43 = vld [vmem:[#allocation2 + $0x88] sm:$0xff]  ;;  %v441_v44 = vld [vmem:[#allocation2 + $0x98] sm:$0xff]  ;;  %v730_v46 = vpack.c.bf16 %v238_v42, %v237_v38  ;;  %p864_p6 = scmp.ne.s32.totalorder %s1145_s14, %s863_s19  ;;  %s869_s5 = scalar_lea.vmem %s868_s30, 256 }
  0x3f   : > { %722 = vmatpush3.bf16.msra.mxu0 %v721_v17  ;;  %v752_v45 = vpack.c.bf16 %v345_v41, %v343_v40  ;;  %v239_v47 = vld [vmem:[%s1188_s2 + $0x60] sm:$0xff]  ;;  %v754_v48 = vpack.c.bf16 %v441_v44, %v439_v43  ;;  %v440_v50 = vld [vmem:[#allocation2 + $0x90] sm:$0xff]  ;;  %v240_v51 = vld [vmem:[%s1188_s2 + $0x68] sm:$0xff]  ;;  %p870_p2 = scmp.lt.s32.totalorder %s1145_s14, %s868_s30  ;;  %p871_p3 = scmp.lt.s32.totalorder %s869_s5, %s863_s19 }
  0x40   : > { %723 = vmatprep.subr.bf16.mxu0 %v934_v0  ;;  %v438_v49 = vld [vmem:[#allocation2 + $0x80] sm:$0xff]  ;;  %v443_v52 = vld [vmem:[#allocation2 + $0xa8] sm:$0xff]  ;;  %v445_v53 = vld [vmem:[#allocation2 + $0xb8] sm:$0xff]  ;;  %v733_v55 = vpack.c.bf16 %v240_v51, %v239_v47  ;;  %p865_p10 = pnand %p864_p6, %p1201_p9 }
  0x41   : > { %745 = vmatpush1.bf16.msra.mxu1 %v744_v27  ;;  %v756_v54 = vpack.c.bf16 %v440_v50, %v438_v49  ;;  %v241_v56 = vld [vmem:[%s1188_s2 + $0x70] sm:$0xff]  ;;  %v758_v57 = vpack.c.bf16 %v445_v53, %v443_v52  ;;  %v442_v58 = vld [vmem:[#allocation2 + $0xa0] sm:$0xff]  ;;  %v242_v60 = vld [vmem:[%s1188_s2 + $0x78] sm:$0xff]  ;;  %p872_p4 = por %p871_p3, %p870_p2 }
  0x42   : > { %747 = vmatprep.subr.bf16.mxu1 %v746_v30  ;;  %v444_v59 = vld [vmem:[#allocation2 + $0xb0] sm:$0xff]  ;;  %v447_v61 = vld [vmem:[#allocation2 + $0xc8] sm:$0xff]  ;;  %v449_v62 = vld [vmem:[#allocation2 + $0xd8] sm:$0xff]  ;;  %v736_v2 = vpack.c.bf16 %v242_v60, %v241_v56  ;;  %p866_p12 = pneg %p865_p10 }
  0x43   : > { %725 = vmatpush3.bf16.msra.mxu0 %v724_v28  ;;  %v760_v63 = vpack.c.bf16 %v444_v59, %v442_v58  ;;  %v762_v3 = vpack.c.bf16 %v449_v62, %v447_v61  ;;  %v446_v4 = vld [vmem:[#allocation2 + $0xc0] sm:$0xff]  ;;  %v448_v5 = vld [vmem:[#allocation2 + $0xd0] sm:$0xff]  ;;  %v451_v6 = vld [vmem:[#allocation2 + $0xe8] sm:$0xff] }
  0x44   : > { %726 = vmatprep.subr.bf16.mxu0 %v934_v0  ;;  %v453_v7 = vld [vmem:[#allocation2 + $0xf8] sm:$0xff]  ;;  %v764_v8 = vpack.c.bf16 %v448_v5, %v446_v4  ;;  %v450_v11 = vld [vmem:[#allocation2 + $0xe0] sm:$0xff]  ;;  %v452_v12 = vld [vmem:[#allocation2 + $0xf0] sm:$0xff]  ;;  %p873_p7 = pnand %p872_p4, %p866_p12 }
  0x45   : > { %749 = vmatpush1.bf16.msra.mxu1 %v748_v36  ;;  %v766_v9 = vpack.c.bf16 %v453_v7, %v451_v6  ;;  %v226_v17 = vld [vmem:[%s224_s11] sm:$0xff] }
  0x46   : > { %751 = vmatprep.subr.bf16.mxu1 %v750_v39 }
  0x47   : > { %728 = vmatpush3.bf16.msra.mxu0 %v727_v37 }
  0x48   : > { %729 = vmatprep.subr.bf16.mxu0 %v934_v0 }
  0x49   : > { %753 = vmatpush1.bf16.msra.mxu1 %v752_v45 }
  0x4a   : > { %755 = vmatprep.subr.bf16.mxu1 %v754_v48 }
  0x4b   : > { %731 = vmatpush3.bf16.msra.mxu0 %v730_v46 }
  0x4c   : > { %732 = vmatprep.subr.bf16.mxu0 %v934_v0  ;;  %656 = vmatmul.mubr.msk.f32.vlgmr.msra.gmra.mrb[0].mxu1 %vm347_vm1, %v1083_v10 }
  0x4d   : > { %757 = vmatpush1.bf16.msra.mxu1 %v756_v54  ;;  %522 = vmatprep.mubr.f32.mxu1 %v936_v1  ;;  %v768_v1 = vpack.c.bf16 %v452_v12, %v450_v11 }
  0x4e   : > { %759 = vmatprep.subr.bf16.mxu1 %v758_v57 }
  0x4f   : > { %734 = vmatpush3.bf16.msra.mxu0 %v733_v55 }
  0x50   : > { %735 = vmatprep.subr.bf16.mxu0 %v934_v0 }
  0x51   : > { %761 = vmatpush1.bf16.msra.mxu1 %v760_v63 }
  0x52   : > { %763 = vmatprep.subr.bf16.mxu1 %v762_v3 }
  0x53   : > { %737 = vmatpush3.bf16.msra.mxu0 %v736_v2 }
  0x55   : > { %765 = vmatpush1.bf16.msra.mxu1 %v764_v8 }
  0x56   : > { %712 = vmatmul.mubr.f32.vlgmr.msra.gmra.mrb[0].mxu0 %v1083_v10  ;;  %767 = vmatprep.subr.bf16.mxu1 %v766_v9 }
  0x59   : > { %769 = vmatpush1.bf16.msra.mxu1 %v768_v1 }
  0xad   : > { %v455_v0 = vpop.permute.xlu0 %454 }
  0xae   : > { %657 = vmatmul.mubr.msk.f32.vlgmr.msra.gmra.mrb[2].mxu1 %vm347_vm1, %v455_v0 }
 0x11f   : > { %v417_v15 = vpop.f32.mrb[0].mxu1 }
 0x120   : > { %v419_v16 = vpop.f32.mrb[1].mxu1 }
 0x129   : > { %v309_v10 = vpop.f32.mrb[0].mxu0 }
 0x12a   : > { %v313_v18 = vadd.f32 %v309_v10, %v226_v17  ;;  %v713_v19 = vpop.f32.mrb[1].mxu0 }
 0x12c   : > { %328 = vperm.xlu1 %831, %v313_v18   ;;  %320 = vperm.xlu0 %830, %v313_v18  }
 0x130   : > { %832 = vset.pattern.permute.xlu1 %v940_v20  ;;  %834 = vset.pattern.permute.xlu0 %v938_v13 }
 0x131   : > { %316 = vperm.xlu1 %832, %v313_v18  }
 0x135   : > { %833 = vset.pattern.permute.xlu1 %v941_v21 }
 0x136   : > { %324 = vperm.xlu1 %833, %v313_v18  }
 0x181   : > { %v524_v22 = vpop.f32.mrb[2].mxu1 }
 0x182   : > { %v526_v23 = vpop.f32.mrb[3].mxu1 }
 0x1ab   : > { %v329_v24 = vpop.permute.xlu1 %328  ;;  %v321_v25 = vpop.permute.xlu0 %320 }
 0x1ac   : > { %v538_v26 = vmul.f32 %v526_v23, %v329_v24  ;;  %v530_v27 = vmul.f32 %v524_v22, %v321_v25  ;;  %v431_v28 = vmul.f32 %v419_v16, %v329_v24  ;;  %v423_v29 = vmul.f32 %v417_v15, %v321_v25 }
 0x1ae   : > { %540 = vrot.lane.b32.xlu1 %v538_v26, %s937_s6  ;;  %532 = vrot.lane.b32.xlu0 %v530_v27, %s937_s6 }
 0x1b0   : > { %v317_v30 = vpop.permute.xlu1 %316 }
 0x1b1   : > { %v422_v31 = vmul.f32 %v417_v15, %v317_v30  ;;  %v529_v33 = vmul.f32 %v524_v22, %v317_v30 }
 0x1b2   : > { %433 = vrot.lane.b32.xlu1 %v431_v28, %s937_s6  ;;  %425 = vrot.lane.b32.xlu0 %v423_v29, %s937_s6 }
 0x1b5   : > { %v325_v32 = vpop.permute.xlu1 %324 }
 0x1b6   : > { %v536_v35 = vmul.f32 %v526_v23, %v325_v32  ;;  %v429_v40 = vmul.f32 %v419_v16, %v325_v32 }
 0x220   : > { %v533_v34 = vpop.permute.xlu0 %532  ;;  %v541_v38 = vpop.permute.xlu1 %540 }
 0x221   : > { %v535_v36 = vadd.f32 %v533_v34, %v529_v33 }
 0x223   : > { %v537_v37 = vadd.f32 %v536_v35, %v535_v36 }
 0x224   : > { %v426_v39 = vpop.permute.xlu0 %425  ;;  %v434_v44 = vpop.permute.xlu1 %433 }
 0x225   : > { %v428_v41 = vadd.f32 %v426_v39, %v422_v31  ;;  %v543_v42 = vadd.f32 %v541_v38, %v537_v37 }
 0x227   : > { %v430_v43 = vadd.f32 %v429_v40, %v428_v41  ;;  %545 = vrot.lane.b32.xlu0 %v543_v42, %s937_s6  ;;  %s551_s6 = scalar_lea.sflag [#allocation4], %s214_s23 }
 0x229   : > { %v436_v45 = vadd.f32 %v434_v44, %v430_v43 }
 0x299   : > { %v546_v46 = vpop.permute.xlu0 %545 }
 0x29a   : > { %v548_v47 = vsel %vm347_vm1, %v436_v45, %v546_v46 }
 0x29b   : > { %549 = vst [vmem:[%s216_s13] sm:$0xff] %v548_v47 }
 0x29c   : > { %876 = shalt.err (!%p873_p7)
}
 0x29d   : > { %s877_s7 = scalar_lea.hbm %s1143_s28, 128  ;;  %s881_s10 = scalar_lea.hbm %s1190_s4, 256 }
 0x29e   : > { %p878_p8 = scmp.ne.s32.totalorder %s1143_s28, %s877_s7  ;;  %p882_p1 = scmp.lt.u32.totalorder %s1143_s28, %s1190_s4 }
 0x29f   : > { %p883_p0 = scmp.lt.u32.totalorder %s881_s10, %s877_s7  ;;  %p885_p6 = scmp.lt.u32.totalorder %s877_s7, %s1143_s28 }
 0x2a0   : > { %p879_p11 = pnand %p878_p8, %p1201_p9 }
 0x2a1   : > { %p884_p5 = por %p883_p0, %p882_p1 }
 0x2a2   : > { %p880_p13 = pneg %p879_p11 }
 0x2a3   : > { %p886_p10 = por %p885_p6, %p884_p5 }
 0x2a5   : > { %p887_p12 = pnand %p886_p10, %p880_p13 }
 0x2a7   : > { %890 = shalt.err (!%p887_p12)
}
 0x2a8   : > { %774 = dma.vmem_to_hbm [thread:$0]  (%p1201_p9), %s1145_s14, 128, %s1143_s28, %s551_s6  }
 0x2a9 PF: > { %p786_p2 = scmp.ge.s32.totalorder %s929_s18, 2  ;;  %s576_s27 = sand.u32 1, %s917_s15  }
 0x2aa   : > { %p1202_p3 = scmp.ne.s32.totalorder %s1195_s26, 0  ;;  %s577_s12 = scalar_lea.sflag [#allocation4], %s576_s27 }
 0x2ac   : > { %p781_p4 = pnand %p786_p2, %p1202_p3 }
 0x2ae   : > { %912 = dma.done.wait (!%p781_p4), %s577_s12, 128  }
 0x2af   : > { %914 = vsyncadd (!%p781_p4), %s577_s12, 4294967168  ;;  %p15_p7 = scmp.ge.s32.totalorder %s993_s21, 4   ;;  %s1203_s15 = smov %s921_s16 }
 0x2b0   : > { %s1204_s16 = smov %s925_s17  ;;  %s1205_s17 = smov %s1004_s24 }
 0x2b1   : > { %s1206_s18 = smov %s993_s21  ;;  %17 = sbr.rel (!%p15_p7) target bundleno = 4 (0x4), region = 80 }
 0x2b8   :  { %582 = vsyncpa [#allocation3], 1 }
 0x2b9   :  { %584 = vsyncpa [#allocation3 + $0x1], 1 }
 0x2ba   :  { %585 = vsyncpa [#allocation4], 1 }
 0x2bb   :  { %587 = vsyncpa [#allocation4 + $0x1], 1 }

</bundles_post_ra>
